<compile_context>
chip_gen: v7x
topology: tpu7x:2x2x1
jax: 0.10.0
libtpu: 0.0.40
codegen_flags: <defaults>
</compile_context>

<pallas_src>
import functools

import jax
import jax.numpy as jnp
from jax import lax
from jax.experimental import pallas as pl
from jax.experimental.pallas import tpu as pltpu


def _round_up(n, m):
    return ((n + m - 1) // m) * m


def _derive_budget_bytes():
    """Half the physical per-core VMEM (v5e/v6e: 64 MiB, v7x: 32 MiB)."""
    cap = 64 * 1024 * 1024          # conservative fallback: v7x per-TC VMEM
    try:
        cap = int(getattr(pltpu.get_tpu_info(), "vmem_capacity_bytes", cap))
    except Exception:
        pass
    return max(16 * 1024 * 1024, cap // 2)


# --------------------------------------------------------------------------
# Kernels
# --------------------------------------------------------------------------
def _gemv_kernel(x_ref, w_ref, b_ref, o_ref):
    # x_ref: (tb, F) tile; w_ref: (1, F) resident; b_ref: (1,) SMEM scalar;
    # o_ref: (1, tb) lane-dense output tile (y transposed).
    acc = lax.dot_general(
        w_ref[...], x_ref[...],
        dimension_numbers=(((1,), (1,)), ((), ())),   # contract both over F
        preferred_element_type=jnp.float32,
    )                                                  # -> (1, tb)
    o_ref[...] = acc + b_ref[0]


def _gemv_ktiled_kernel(x_ref, w_ref, b_ref, o_ref, acc_ref, *, f_total, tk):
    # Grid = (B tiles ["parallel"], F chunks ["arbitrary" reduction]).
    k = pl.program_id(1)

    @pl.when(k == 0)
    def _init():
        acc_ref[...] = jnp.zeros_like(acc_ref)

    xv = x_ref[...]
    wv = w_ref[...]
    if f_total % tk:                       # static: ragged last F chunk exists
        limit = f_total - k * tk           # >= tk for every non-last chunk
        xv = jnp.where(lax.broadcasted_iota(jnp.int32, xv.shape, 1) < limit,
                       xv, jnp.zeros_like(xv))
        wv = jnp.where(lax.broadcasted_iota(jnp.int32, wv.shape, 1) < limit,
                       wv, jnp.zeros_like(wv))

    acc_ref[...] += lax.dot_general(
        wv, xv,
        dimension_numbers=(((1,), (1,)), ((), ())),
        preferred_element_type=jnp.float32,
    )                                                  # (1, tb) partial sums

    @pl.when(k == pl.num_programs(1) - 1)
    def _finalize():
        o_ref[...] = acc_ref[...] + b_ref[0]


# --------------------------------------------------------------------------
# Wrapper
# --------------------------------------------------------------------------
def mock_model_forward(x, weight, bias, *, vmem_budget_bytes=None):
    """x: (B, A, L); weight: (1, A*L); bias: (1,)  ->  (B, 1) float32."""
    B = x.shape[0]
    F = x.shape[1] * x.shape[2]
    x_flat = x.reshape(B, F)                    # == torch.flatten(start_dim=1)
    w = weight.reshape(1, F).astype(jnp.float32)
    b = bias.reshape(1).astype(jnp.float32)

    budget = (_derive_budget_bytes() if vmem_budget_bytes is None
              else int(vmem_budget_bytes))
    vmem_limit = max(budget, 16 * 1024 * 1024)          # told to Mosaic
    tile_target = min(16 * 1024 * 1024, budget // 4)    # x tile (double-buffered)
    row_bytes = 4 * F                                    # one f32 row of x

    base_rows = B if B <= 128 else 128

    if base_rows * row_bytes <= tile_target:
        # ---------------- whole-F path (single K block) ----------------
        if B <= 128:
            tb = B                                       # one full-array block
        else:
            tb_cap = max(128, (tile_target // row_bytes) // 128 * 128)
            tb_half = _round_up(pl.cdiv(B, 2), 128)      # >= 2 steps -> dual TC
            tb = min(tb_cap, tb_half)
        grid = (pl.cdiv(B, tb),)

        def build(w_spec):
            return pl.pallas_call(
                _gemv_kernel,
                out_shape=jax.ShapeDtypeStruct((1, B), jnp.float32),
                grid_spec=pltpu.PrefetchScalarGridSpec(
                    num_scalar_prefetch=0,
                    grid=grid,
                    in_specs=[
                        pl.BlockSpec((tb, F), lambda i: (i, 0)),            # x
                        w_spec,                                             # W
                        pl.BlockSpec(memory_space=pltpu.MemorySpace.SMEM),  # bias
                    ],
                    out_specs=pl.BlockSpec((1, tb), lambda i: (0, i)),      # y^T
                ),
                compiler_params=pltpu.CompilerParams(
                    dimension_semantics=("parallel",),
                    vmem_limit_bytes=int(vmem_limit),
                ),
            )

        try:
            # W has a constant index_map (DMA'd once) -> a single buffer is
            # enough; reclaims F*32 B of VMEM.
            out_t = build(pl.BlockSpec((1, F), lambda i: (0, 0),
                                       pipeline_mode=pl.Buffered(1)))(x_flat, w, b)
        except Exception:
            # Fallback for Pallas builds that reject single-buffering.
            out_t = build(pl.BlockSpec((1, F), lambda i: (0, 0)))(x_flat, w, b)
    else:
        # ---------------- K-tiled path (A*L too large for whole-row tiles) ---
        tb = base_rows
        tk = max(128, (tile_target // (4 * tb)) // 128 * 128)
        grid = (pl.cdiv(B, tb), pl.cdiv(F, tk))
        kernel = functools.partial(_gemv_ktiled_kernel, f_total=F, tk=tk)
        out_t = pl.pallas_call(
            kernel,
            out_shape=jax.ShapeDtypeStruct((1, B), jnp.float32),
            grid_spec=pltpu.PrefetchScalarGridSpec(
                num_scalar_prefetch=0,
                grid=grid,
                in_specs=[
                    pl.BlockSpec((tb, tk), lambda i, k: (i, k)),            # x
                    pl.BlockSpec((1, tk), lambda i, k: (0, k)),             # W
                    pl.BlockSpec(memory_space=pltpu.MemorySpace.SMEM),      # bias
                ],
                out_specs=pl.BlockSpec((1, tb), lambda i, k: (0, i)),       # y^T
                scratch_shapes=[pltpu.VMEM((1, tb), jnp.float32)],          # acc
            ),
            compiler_params=pltpu.CompilerParams(
                dimension_semantics=("parallel", "arbitrary"),
                vmem_limit_bytes=int(vmem_limit),
            ),
        )(x_flat, w, b)

    # (1, B) -> (B, 1): tiny layout plumbing, matches nn.Linear's output shape.
    return out_t.reshape(B, 1)


# --------------------------------------------------------------------------
# Self-test
# --------------------------------------------------------------------------
if __name__ == "__main__":
    def _torch_like_linear_params(key, in_features):
        kw, kb = jax.random.split(key)
        bound = 1.0 / jnp.sqrt(jnp.float32(in_features))
        wgt = jax.random.uniform(kw, (1, in_features), jnp.float32, -bound, bound)
        bs = jax.random.uniform(kb, (1,), jnp.float32, -bound, bound)
        return wgt, bs

    def _check(B, A, L, key, atol, rtol, **kw):
        kx, kp = jax.random.split(key)
        F = A * L
        wgt, bs = _torch_like_linear_params(kp, F)
        x = jax.random.normal(kx, (B, A, L), jnp.float32)
        y = jax.block_until_ready(mock_model_forward(x, wgt, bs, **kw))
        y_ref = x.reshape(B, F) @ wgt.T + bs
        assert y.shape == (B, 1), y.shape
        assert jnp.allclose(y, y_ref, atol=atol, rtol=rtol), (y, y_ref)

    key = jax.random.PRNGKey(0)
    k1, k2, k3 = jax.random.split(key, 3)

    # 1) The MockModel test shape: A=4, L=8, batch=2 (single-block fast path).
    _check(B=2, A=4, L=8, key=k1, atol=1e-4, rtol=1e-4)

    # 2) Multi-tile batch with a ragged trailing block (no wrapper-side pad,
    #    two "parallel" grid steps).
    _check(B=300, A=4, L=8, key=k2, atol=1e-4, rtol=1e-4)

    # 3) Large-A*L path: force a tiny budget so the K-reduction grid axis and
    #    ragged-F masking are exercised at small, fast shapes.  Looser
    #    tolerance: accumulation is split across K chunks.
    _check(B=16, A=8, L=160, key=k3, atol=5e-3, rtol=5e-3,
           vmem_budget_bytes=256 * 1024)

    print("KERNEL_OK")
</pallas_src>

<mosaic_0001>
module attributes {stable_mosaic.version = 11 : i64} {
  func.func @_gemv_kernel(%arg0: i32, %arg1: memref<2x32xf32, #tpu.memory_space<vmem>>, %arg2: memref<1x32xf32, #tpu.memory_space<vmem>>, %arg3: memref<1xf32, #tpu.memory_space<smem>>, %arg4: memref<1x2xf32, #tpu.memory_space<vmem>>) attributes {dimension_semantics = [#tpu.dimension_semantics<parallel>], iteration_bounds = array<i64: 1>, scalar_prefetch = 0 : i64, scratch_operands = 0 : i64, tpu.core_type = #tpu.core_type<tc>, window_params = [{transform_indices = @transform_0, window_bounds = array<i64: 2, 32>}, {pipeline_mode = #tpu.pipeline_mode<synchronous>, transform_indices = @transform_1, window_bounds = array<i64: 1, 32>}, {transform_indices = @transform_2, window_bounds = array<i64: 1>}, {transform_indices = @transform_3, window_bounds = array<i64: 1, 2>}]} {
    %c0 = arith.constant 0 : index
    %c0_0 = arith.constant 0 : index
    %0 = vector.load %arg2[%c0, %c0_0] : memref<1x32xf32, #tpu.memory_space<vmem>>, vector<1x32xf32>
    %c0_1 = arith.constant 0 : index
    %c0_2 = arith.constant 0 : index
    %1 = vector.load %arg1[%c0_1, %c0_2] : memref<2x32xf32, #tpu.memory_space<vmem>>, vector<2x32xf32>
    %cst = arith.constant dense<0.000000e+00> : vector<1x2xf32>
    %2 = tpu.matmul %0, %1, %cst {dimension_numbers = #tpu.dot_dimension_numbers<[1], [1], [0], [0], [0, 0, 1, 0], [], []>} : vector<1x32xf32>, vector<2x32xf32>, vector<1x2xf32> -> vector<1x2xf32>
    %c0_3 = arith.constant 0 : index
    %3 = memref.load %arg3[%c0_3] : memref<1xf32, #tpu.memory_space<smem>>
    %4 = vector.broadcast %3 : f32 to vector<1x2xf32>
    %5 = arith.addf %2, %4 : vector<1x2xf32>
    %c0_4 = arith.constant 0 : index
    %c0_5 = arith.constant 0 : index
    %6 = vector.load %arg4[%c0_4, %c0_5] : memref<1x2xf32, #tpu.memory_space<vmem>>, vector<1x2xf32>
    tpu.vector_store %arg4[%c0_4, %c0_5], %5 {strides = array<i32>} : memref<1x2xf32, #tpu.memory_space<vmem>>, vector<1x2xf32>,
    return
  }
  func.func @transform_0(%arg0: i32) -> (i32, i32) {
    %c0_i32 = arith.constant 0 : i32
    %c0_i32_0 = arith.constant 0 : i32
    return %arg0, %c0_i32 : i32, i32
  }
  func.func @transform_1(%arg0: i32) -> (i32, i32) {
    %c0_i32 = arith.constant 0 : i32
    %c0_i32_0 = arith.constant 0 : i32
    %c0_i32_1 = arith.constant 0 : i32
    return %c0_i32, %c0_i32_0 : i32, i32
  }
  func.func @transform_2(%arg0: i32) -> i32 {
    %c0_i32 = arith.constant 0 : i32
    %c0_i32_0 = arith.constant 0 : i32
    return %c0_i32 : i32
  }
  func.func @transform_3(%arg0: i32) -> (i32, i32) {
    %c0_i32 = arith.constant 0 : i32
    %c0_i32_0 = arith.constant 0 : i32
    return %c0_i32, %arg0 : i32, i32
  }
}

module attributes {stable_mosaic.version = 11 : i64} {
  func.func @_gemv_kernel(%arg0: i32, %arg1: memref<2x32xf32, #tpu.memory_space<vmem>>, %arg2: memref<1x32xf32, #tpu.memory_space<vmem>>, %arg3: memref<1xf32, #tpu.memory_space<smem>>, %arg4: memref<1x2xf32, #tpu.memory_space<vmem>>) attributes {dimension_semantics = [#tpu.dimension_semantics<parallel>], iteration_bounds = array<i64: 1>, scalar_prefetch = 0 : i64, scratch_operands = 0 : i64, tpu.core_type = #tpu.core_type<tc>, window_params = [{transform_indices = @transform_0, window_bounds = array<i64: 2, 32>}, {pipeline_mode = #tpu.pipeline_mode<synchronous>, transform_indices = @transform_1, window_bounds = array<i64: 1, 32>}, {transform_indices = @transform_2, window_bounds = array<i64: 1>}, {transform_indices = @transform_3, window_bounds = array<i64: 1, 2>}]} {
    %c0 = arith.constant 0 : index
    %c0_0 = arith.constant 0 : index
    %0 = vector.load %arg2[%c0, %c0_0] : memref<1x32xf32, #tpu.memory_space<vmem>>, vector<1x32xf32>
    %c0_1 = arith.constant 0 : index
    %c0_2 = arith.constant 0 : index
    %1 = vector.load %arg1[%c0_1, %c0_2] : memref<2x32xf32, #tpu.memory_space<vmem>>, vector<2x32xf32>
    %cst = arith.constant dense<0.000000e+00> : vector<1x2xf32>
    %2 = tpu.matmul %0, %1, %cst {dimension_numbers = #tpu.dot_dimension_numbers<[1], [1], [0], [0], [0, 0, 1, 0], [], []>} : vector<1x32xf32>, vector<2x32xf32>, vector<1x2xf32> -> vector<1x2xf32>
    %c0_3 = arith.constant 0 : index
    %3 = memref.load %arg3[%c0_3] : memref<1xf32, #tpu.memory_space<smem>>
    %4 = vector.broadcast %3 : f32 to vector<1x2xf32>
    %5 = arith.addf %2, %4 : vector<1x2xf32>
    %c0_4 = arith.constant 0 : index
    %c0_5 = arith.constant 0 : index
    %6 = vector.load %arg4[%c0_4, %c0_5] : memref<1x2xf32, #tpu.memory_space<vmem>>, vector<1x2xf32>
    tpu.vector_store %arg4[%c0_4, %c0_5], %5 {strides = array<i32>} : memref<1x2xf32, #tpu.memory_space<vmem>>, vector<1x2xf32>,
    return
  }
  func.func @transform_0(%arg0: i32) -> (i32, i32) {
    %c0_i32 = arith.constant 0 : i32
    %c0_i32_0 = arith.constant 0 : i32
    return %arg0, %c0_i32 : i32, i32
  }
  func.func @transform_1(%arg0: i32) -> (i32, i32) {
    %c0_i32 = arith.constant 0 : i32
    %c0_i32_0 = arith.constant 0 : i32
    %c0_i32_1 = arith.constant 0 : i32
    return %c0_i32, %c0_i32_0 : i32, i32
  }
  func.func @transform_2(%arg0: i32) -> i32 {
    %c0_i32 = arith.constant 0 : i32
    %c0_i32_0 = arith.constant 0 : i32
    return %c0_i32 : i32
  }
  func.func @transform_3(%arg0: i32) -> (i32, i32) {
    %c0_i32 = arith.constant 0 : i32
    %c0_i32_0 = arith.constant 0 : i32
    return %c0_i32, %arg0 : i32, i32
  }
}

</mosaic_0001>

<bundles_post_ra>
// kernel: tpu_custom_call.1
= control target key start
LH: loop header
LB: loop body
LE: loop exit
PB: predicated region body
PF: predicated region fallthrough
CT: control target
= control target key end

     0   :  { %vm20_vm0 = vcmask 261120   ;;  %v149_v1 = vmov 0.0   ;;  %vm150_vm1 = vmmov 0   ;;  %s193_s0 = inlined_call_operand.vmem [shape: f32[2,32], index: 0, kind: input, shape index: {}]   ;;  %s194_s1 = inlined_call_operand.vmem [shape: f32[1,32], index: 1, kind: input, shape index: {}]   ;;  %s195_s2 = inlined_call_operand.<no memory space> [shape: f32[1], index: 2, kind: input, shape index: {}]   ;;  %s196_s3 = inlined_call_operand.hbm [shape: f32[1,2], index: 3, kind: output, shape index: {}]  }
   0x1   :  { %v17_v0 = vld [vmem:[%s193_s0] sm:$0x3]  ;;  %117 = vmatprep.subr.mxu0 %v149_v1  ;;  %119 = vmatprep.mubr.msk.f32.mxu0 %vm150_vm1, %v149_v1 }
   0x2   :  { %9 = vsyncpa [#allocation4], 0  ;;  %118 = vmatpush3.xpose.msk.msra.mxu0 %vm20_vm0, %v17_v0  ;;  %v16_v2 = vld [vmem:[%s194_s1] sm:$0x1]  ;;  %v19_v3 = vstv %s195_s2  ;;  %s151_s18 = smov [#allocation3]   ;;  %vm97_vm2 = vcmask 8192  }
   0x3   :  { %s105_s19 = sshll.u32 %s151_s18, 4  ;;  %s106_s19 = int_to_ptr.vmem [resolvable:$true] %s105_s19 }
   0x4   :  { %s125_s0 = scalar_lea.vmem %s106_s19, 16  ;;  %s129_s20 = scalar_lea.vmem %s106_s19, 32 }
   0x5   :  { %120 = vmatmul.mubr.msk.f32.vlgmr.msra.gmra.mrb[0].mxu0 %vm20_vm0, %v16_v2  ;;  %p126_p0 = scmp.ne.s32.totalorder %s106_s19, %s125_s0  ;;  %p130_p1 = scmp.lt.s32.totalorder %s106_s19, %s106_s19 }
   0x6   :  { %p131_p2 = scmp.lt.s32.totalorder %s129_s20, %s125_s0 }
   0x8   :  { %p132_p3 = por %p131_p2, %p130_p1 }
   0xa   :  { %p133_p4 = pnand %p132_p3, %p126_p0 }
  0xd8   :  { %v93_v4 = vpop.f32.mrb[0].mxu0 }
  0xd9   :  { %v94_v5 = vadd.f32 %v93_v4, %v19_v3  ;;  %v121_v6 = vpop.f32.mrb[1].mxu0 }
  0xdb   :  { %98 = vst.msk [vmem:[#allocation3] sm:$0x1] %vm97_vm2, %v94_v5 }
  0xdc   :  { %136 = shalt.err (!%p133_p4)
}
  0xdd   :  { %s137_s2 = scalar_lea.hbm %s196_s3, 16 }
  0xde   :  { %p138_p5 = scmp.ne.s32.totalorder %s196_s3, %s137_s2  ;;  %p141_p6 = scmp.lt.u32.totalorder %s137_s2, %s196_s3 }
  0xe0   :  { %p143_p7 = pnand %p141_p6, %p138_p5 }
  0xe2   :  { %146 = shalt.err (!%p143_p7)
}
  0xe3   :  { %108 = dma.vmem_to_hbm [thread:$0]  %s106_s19, 16, %s196_s3, [#allocation4]  }
  0xe4   :  { %147 = dma.done.wait [#allocation4], 16  }
  0xe5   :  { %148 = vsyncadd [#allocation4], 4294967280 }
  0xe6   :  { %112 = vsyncpa [#allocation4], 1 }

// kernel: tpu_custom_call.1
= control target key start
LH: loop header
LB: loop body
LE: loop exit
PB: predicated region body
PF: predicated region fallthrough
CT: control target
= control target key end

     0   :  { %vm20_vm0 = vcmask 261120   ;;  %v149_v1 = vmov 0.0   ;;  %vm150_vm1 = vmmov 0   ;;  %s193_s0 = inlined_call_operand.vmem [shape: f32[2,32], index: 0, kind: input, shape index: {}]   ;;  %s194_s1 = inlined_call_operand.vmem [shape: f32[1,32], index: 1, kind: input, shape index: {}]   ;;  %s195_s2 = inlined_call_operand.<no memory space> [shape: f32[1], index: 2, kind: input, shape index: {}]   ;;  %s196_s3 = inlined_call_operand.hbm [shape: f32[1,2], index: 3, kind: output, shape index: {}]  }
   0x1   :  { %v17_v0 = vld [vmem:[%s193_s0] sm:$0x3]  ;;  %117 = vmatprep.subr.mxu0 %v149_v1  ;;  %119 = vmatprep.mubr.msk.f32.mxu0 %vm150_vm1, %v149_v1 }
   0x2   :  { %9 = vsyncpa [#allocation4], 0  ;;  %118 = vmatpush3.xpose.msk.msra.mxu0 %vm20_vm0, %v17_v0  ;;  %v16_v2 = vld [vmem:[%s194_s1] sm:$0x1]  ;;  %v19_v3 = vstv %s195_s2  ;;  %s151_s18 = smov [#allocation3]   ;;  %vm97_vm2 = vcmask 8192  }
   0x3   :  { %s105_s19 = sshll.u32 %s151_s18, 4  ;;  %s106_s19 = int_to_ptr.vmem [resolvable:$true] %s105_s19 }
   0x4   :  { %s125_s0 = scalar_lea.vmem %s106_s19, 16  ;;  %s129_s20 = scalar_lea.vmem %s106_s19, 32 }
   0x5   :  { %120 = vmatmul.mubr.msk.f32.vlgmr.msra.gmra.mrb[0].mxu0 %vm20_vm0, %v16_v2  ;;  %p126_p0 = scmp.ne.s32.totalorder %s106_s19, %s125_s0  ;;  %p130_p1 = scmp.lt.s32.totalorder %s106_s19, %s106_s19 }
   0x6   :  { %p131_p2 = scmp.lt.s32.totalorder %s129_s20, %s125_s0 }
   0x8   :  { %p132_p3 = por %p131_p2, %p130_p1 }
   0xa   :  { %p133_p4 = pnand %p132_p3, %p126_p0 }
  0xd8   :  { %v93_v4 = vpop.f32.mrb[0].mxu0 }
  0xd9   :  { %v94_v5 = vadd.f32 %v93_v4, %v19_v3  ;;  %v121_v6 = vpop.f32.mrb[1].mxu0 }
  0xdb   :  { %98 = vst.msk [vmem:[#allocation3] sm:$0x1] %vm97_vm2, %v94_v5 }
  0xdc   :  { %136 = shalt.err (!%p133_p4)
}
  0xdd   :  { %s137_s2 = scalar_lea.hbm %s196_s3, 16 }
  0xde   :  { %p138_p5 = scmp.ne.s32.totalorder %s196_s3, %s137_s2  ;;  %p141_p6 = scmp.lt.u32.totalorder %s137_s2, %s196_s3 }
  0xe0   :  { %p143_p7 = pnand %p141_p6, %p138_p5 }
  0xe2   :  { %146 = shalt.err (!%p143_p7)
}
  0xe3   :  { %108 = dma.vmem_to_hbm [thread:$0]  %s106_s19, 16, %s196_s3, [#allocation4]  }
  0xe4   :  { %147 = dma.done.wait [#allocation4], 16  }
  0xe5   :  { %148 = vsyncadd [#allocation4], 4294967280 }
  0xe6   :  { %112 = vsyncpa [#allocation4], 1 }

</bundles_post_ra>
